<compile_context>
chip_gen: v6e
topology: v6e:2x2x1
jax: 0.10.0
libtpu: 0.0.40
codegen_flags: <defaults>
</compile_context>

<pallas_src>
import functools

import jax
import jax.numpy as jnp
from jax.experimental import pallas as pl
from jax.experimental.pallas import tpu as pltpu


# ------------------------------ small helpers --------------------------------

def _round_up(x, m):
    return ((x + m - 1) // m) * m


def _next_pow2(x):
    return 1 if x <= 1 else 1 << (x - 1).bit_length()


def _detect_vmem_capacity_bytes():
    try:
        info = pltpu.get_tpu_info()
        cap = int(getattr(info, "vmem_capacity_bytes", 0) or 0)
        if cap > 0:
            return cap
    except Exception:
        pass
    return 64 * 1024 * 1024  # conservative (v7x-sized) default


_VMEM_CAPACITY = _detect_vmem_capacity_bytes()

if _VMEM_CAPACITY <= 64 * 1024 * 1024:
    # v7x: 64 MiB physical VMEM per TensorCore (scoped default 32 MiB).
    _TM_MAX, _TN_MAX, _TK_MAX = 512, 1024, 1024
    _VMEM_BUDGET = 44 * 1024 * 1024
else:
    # v5e / v6e: 128 MiB VMEM (scoped default only 16/32 MiB -> raise explicitly).
    _TM_MAX, _TN_MAX, _TK_MAX = 512, 1024, 2048
    _VMEM_BUDGET = 96 * 1024 * 1024


def _pick_tile(dim, unit, cap):
    """Largest tile (multiple of `unit`, <= cap) that minimizes the padded extent."""
    best_t = unit
    best_pad = _round_up(dim, unit)
    cap = max(unit, min(cap, best_pad))
    t = unit
    while t <= cap:
        pad = _round_up(dim, t)
        if pad < best_pad or (pad == best_pad and t > best_t):
            best_t, best_pad = t, pad
        t += unit
    return best_t, best_pad


def _plan_rows(M, cap):
    """Pick (tm, Mp) for the row dimension.

    Rows are bucketed on a log scale (granularity = next_pow2(M)/16, >= 8) so the
    jitted forward compiles only a bounded set of shapes while wasting <= ~1/16 of
    the MXU rows; tm is the largest sublane-aligned tile <= cap dividing the bucket.
    """
    M = max(int(M), 1)
    gran = max(8, _next_pow2(M) // 16)
    mp = _round_up(M, gran)
    t = min(cap, mp)
    t -= t % 8
    while t >= 8:
        if mp % t == 0:
            return t, mp
        t -= 8
    return 8, mp


# ----------------------------- Pallas kernel --------------------------------

def _linear_kernel(x_ref, wt_ref, b_ref, o_ref, acc_ref):
    # x_ref: (tm, tk) bf16, wt_ref: (tk, tn) bf16, b_ref: (1, tn) f32,
    # o_ref: (tm, tn) out dtype, acc_ref: (tm, tn) f32.
    k = pl.program_id(2)

    @pl.when(k == 0)
    def _():
        # Fold bias into the accumulator init (keeps the final-K epilogue to a
        # pure cast + store).
        acc_ref[...] = jnp.broadcast_to(b_ref[...].astype(jnp.float32),
                                        acc_ref.shape)

    acc_ref[...] += jnp.dot(x_ref[...], wt_ref[...],
                            preferred_element_type=jnp.float32)

    @pl.when(k == pl.num_programs(2) - 1)
    def _():
        o_ref[...] = acc_ref[...].astype(o_ref.dtype)


def _weight_spec(tk, tn, index_map, n_buffers):
    if n_buffers > 2:
        try:
            return pl.BlockSpec((tk, tn), index_map,
                                pipeline_mode=pl.Buffered(n_buffers))
        except Exception:
            pass
    return pl.BlockSpec((tk, tn), index_map)


def pallas_linear(x_p, wt_p, b_p, *, tm, tn, tk, out_dtype):
    """y_p = x_p @ wt_p + b_p on pre-padded, tile-aligned, bf16 operands.

    x_p: (Mp, Kp) bf16, wt_p: (Kp, Np) bf16, b_p: (1, Np) f32  ->  (Mp, Np) out_dtype
    """
    Mp, Kp = x_p.shape
    Kp2, Np = wt_p.shape
    assert Kp == Kp2 and Mp % tm == 0 and Np % tn == 0 and Kp % tk == 0

    gm, gn, gk = Mp // tm, Np // tn, Kp // tk

    # v7x megacore: put a "parallel" axis with extent >= 2 first if the M-tile
    # axis is degenerate (harmless on the single-TC v5e/v6e).
    if gm == 1 and gn > 1:
        grid = (gn, gm, gk)
        x_map = lambda j, i, k: (i, k)
        w_map = lambda j, i, k: (k, j)
        b_map = lambda j, i, k: (0, j)
        o_map = lambda j, i, k: (i, j)
    else:
        grid = (gm, gn, gk)
        x_map = lambda i, j, k: (i, k)
        w_map = lambda i, j, k: (k, j)
        b_map = lambda i, j, k: (0, j)
        o_map = lambda i, j, k: (i, j)

    # Triple-buffer the streamed weight tiles (weight-bandwidth-bound small-M
    # regime) when the grid has enough steps for it to matter.
    w_buffers = 3 if gm * gn * gk >= 3 else 2

    in_bytes = 2   # bf16 activations / weights
    acc_bytes = 4  # f32 accumulator / output tile
    vmem_need = (2 * tm * tk * in_bytes            # x tiles (double-buffered)
                 + w_buffers * tk * tn * in_bytes  # weight tiles
                 + 2 * tn * 4                      # bias tiles
                 + 2 * tm * tn * acc_bytes         # output tiles (double-buffered)
                 + tm * tn * acc_bytes)            # accumulator scratch
    vmem_limit = int(min(_VMEM_BUDGET,
                         max(vmem_need + 4 * 1024 * 1024, 32 * 1024 * 1024)))

    cost = pl.CostEstimate(
        flops=2 * Mp * Np * Kp,
        transcendentals=0,
        bytes_accessed=((Mp * Kp * gn + Kp * Np * gm) * in_bytes
                        + Np * 4 + Mp * Np * acc_bytes),
    )

    return pl.pallas_call(
        _linear_kernel,
        out_shape=jax.ShapeDtypeStruct((Mp, Np), out_dtype),
        grid_spec=pltpu.PrefetchScalarGridSpec(
            num_scalar_prefetch=0,
            grid=grid,
            in_specs=[
                pl.BlockSpec((tm, tk), x_map),
                _weight_spec(tk, tn, w_map, w_buffers),
                pl.BlockSpec((1, tn), b_map),
            ],
            out_specs=pl.BlockSpec((tm, tn), o_map),
            scratch_shapes=[pltpu.VMEM((tm, tn), jnp.float32)],
        ),
        compiler_params=pltpu.CompilerParams(
            dimension_semantics=("parallel", "parallel", "arbitrary"),
            vmem_limit_bytes=vmem_limit,
        ),
        cost_estimate=cost,
    )(x_p, wt_p, b_p)


# Whole forward path (cast -> pad -> kernel -> slice -> reshape) under one jit;
# tile sizes / padded rows are static so each bucketed shape compiles once.
@functools.partial(jax.jit,
                   static_argnames=("tm", "tn", "tk", "mp", "out_features"))
def _linear_forward(x, wt_p, b_p, *, tm, tn, tk, mp, out_features):
    leading = x.shape[:-1]
    x2d = x.reshape(-1, x.shape[-1])
    M, K = x2d.shape
    Kp = wt_p.shape[0]
    x_pad = jnp.pad(x2d.astype(jnp.bfloat16), ((0, mp - M), (0, Kp - K)))
    y_pad = pallas_linear(x_pad, wt_p, b_p, tm=tm, tn=tn, tk=tk,
                          out_dtype=x.dtype)
    return y_pad[:M, :out_features].reshape(*leading, out_features)


# ------------------------- wrapped "module" (Linear) ------------------------

class PallasLinear:
    """Minimal nn.Linear analogue; forward runs the tiled Pallas kernel."""

    def __init__(self, in_features, out_features, key, dtype=jnp.float32):
        k1, k2 = jax.random.split(key)
        bound = 1.0 / (in_features ** 0.5)
        self.in_features = in_features
        self.out_features = out_features
        self.weight = jax.random.uniform(
            k1, (out_features, in_features), dtype, -bound, bound)
        self.bias = jax.random.uniform(
            k2, (out_features,), dtype, -bound, bound)

        # Tile plan for (K, N) is fixed at init; minimize zero-padding waste.
        self.tk, kp = _pick_tile(in_features, 128, _TK_MAX)
        self.tn, np_ = _pick_tile(out_features, 128, _TN_MAX)

        # Pre-transpose, pre-cast (bf16) and pre-pad ONCE: bf16 hits the MXU peak
        # and halves weight HBM bytes; bias stays f32 (folded into the f32
        # accumulator inside the kernel).
        wt = self.weight.T.astype(jnp.bfloat16)                       # (K, N)
        self.wt_padded = jnp.pad(
            wt, ((0, kp - in_features), (0, np_ - out_features)))
        self.bias_padded = jnp.pad(
            self.bias.astype(jnp.float32),
            (0, np_ - out_features)).reshape(1, np_)

    def parameters(self, recurse=False):
        return [self.weight, self.bias]

    def named_modules(self):
        return []  # leaf module

    def forward(self, x):
        assert x.shape[-1] == self.in_features
        M = 1
        for d in x.shape[:-1]:
            M *= d
        tm, mp = _plan_rows(M, _TM_MAX)
        return _linear_forward(x, self.wt_padded, self.bias_padded,
                               tm=tm, tn=self.tn, tk=self.tk, mp=mp,
                               out_features=self.out_features)


# --------------------- SequentialCompressor wrapper (glue) ------------------

class OffLoadedModule:
    def __init__(self, module, device=None):
        self._module = module
        self.device = device

    def load_parameters(self):
        # On a single-TPU JAX backend parameters already live on-device; no-op.
        self._module.parameters(recurse=False)

    def offload_parameters(self):
        # TODO(synk): host offload / torch.cuda.empty_cache has no Pallas equivalent.
        pass

    def offloaded_forward(self, *args, **kwargs):
        self.load_parameters()
        output = self._module.forward(*args, **kwargs)
        self.offload_parameters()
        return output

    def forward(self, *args, **kwargs):
        return self.offloaded_forward(*args, **kwargs)


class SequentialCompressor(OffLoadedModule):
    def __init__(self, module, device=None, compression_algorithm=None,
                 parent_module=None):
        self._module = module
        self.device = device
        self.compression_algorithm = compression_algorithm
        self.parent_module = parent_module
        self.cache = None
        self.cache_inputs = False
        # Recursive wrapping of named child modules (leaf module here: nothing to wrap).
        for _name, _child in (module.named_modules() or []):
            pass

    def is_compressible(self):
        if self.compression_algorithm is not None:
            return self.compression_algorithm.is_compressible(self._module)
        return False

    def evaluate_cached_inputs(self, inputs, *args, **kwargs):
        if self.cache is None:
            if self.parent_module is None:
                for inp in inputs:
                    self.forward(inp, *args, **kwargs)
            else:
                self.cache_inputs = True
                self.parent_module.evaluate_cached_inputs(inputs, *args, **kwargs)

    def clear_cached(self):
        self.cache = None
        self.cache_inputs = False

    def forward(self, *args, **kwargs):
        if self.cache_inputs:
            if self.cache is None:
                self.cache = {'args': [args], 'kwargs': [kwargs]}
            else:
                self.cache['args'].append(args)
                self.cache['kwargs'].append(kwargs)
        return self.offloaded_forward(*args, **kwargs)


# --------------------------------- main --------------------------------------

if __name__ == "__main__":
    key = jax.random.PRNGKey(0)
    kx, kw = jax.random.split(key)

    batch, seq, hidden = 2, 8, 32
    x = jax.random.normal(kx, (batch, seq, hidden), jnp.float32)

    linear = PallasLinear(hidden, hidden, kw)
    compressor = SequentialCompressor(linear, device="tpu")

    y = compressor.forward(x)
    y = jax.block_until_ready(y)

    # reference: PyTorch nn.Linear semantics y = x @ W^T + b (f32 reference;
    # kernel computes in bf16 with an f32 accumulator, hence looser tolerance).
    y_ref = jnp.einsum("bsh,oh->bso", x, linear.weight) + linear.bias
    assert y.shape == (batch, seq, hidden)
    assert jnp.allclose(y, y_ref, atol=2e-2, rtol=2e-2)

    # also exercise the input-caching path of the compressor
    compressor.cache_inputs = True
    _ = jax.block_until_ready(compressor.forward(x))
    assert compressor.cache is not None and len(compressor.cache['args']) == 1
    compressor.clear_cached()

    print("KERNEL_OK")
</pallas_src>

<mosaic_0001>
module attributes {stable_mosaic.version = 11 : i64} {
  func.func @_linear_kernel(%arg0: i32, %arg1: i32, %arg2: i32, %arg3: memref<16x128xbf16, #tpu.memory_space<vmem>>, %arg4: memref<128x128xbf16, #tpu.memory_space<vmem>>, %arg5: memref<1x128xf32, #tpu.memory_space<vmem>>, %arg6: memref<16x128xf32, #tpu.memory_space<vmem>>, %arg7: memref<16x128xf32, #tpu.memory_space<vmem>>) attributes {dimension_semantics = [#tpu.dimension_semantics<parallel>, #tpu.dimension_semantics<parallel>, #tpu.dimension_semantics<arbitrary>], iteration_bounds = array<i64: 1, 1, 1>, scalar_prefetch = 0 : i64, scratch_operands = 1 : i64, tpu.core_type = #tpu.core_type<tc>, window_params = [{transform_indices = @transform_0, window_bounds = array<i64: 16, 128>}, {transform_indices = @transform_1, window_bounds = array<i64: 128, 128>}, {transform_indices = @transform_2, window_bounds = array<i64: 1, 128>}, {transform_indices = @transform_3, window_bounds = array<i64: 16, 128>}]} {
    %c0_i32 = arith.constant 0 : i32
    %0 = arith.cmpi eq, %arg2, %c0_i32 : i32
    %1 = arith.extui %0 : i1 to i32
    %c0_i32_0 = arith.constant 0 : i32
    %2 = arith.cmpi ne, %1, %c0_i32_0 : i32
    scf.if %2 {
      %c0_10 = arith.constant 0 : index
      %c0_11 = arith.constant 0 : index
      %12 = vector.load %arg5[%c0_10, %c0_11] : memref<1x128xf32, #tpu.memory_space<vmem>>, vector<1x128xf32>
      %13 = vector.shape_cast %12 : vector<1x128xf32> to vector<1x128xf32>
      %14 = vector.broadcast %13 : vector<1x128xf32> to vector<16x128xf32>
      %c0_12 = arith.constant 0 : index
      %c0_13 = arith.constant 0 : index
      %15 = vector.load %arg7[%c0_12, %c0_13] : memref<16x128xf32, #tpu.memory_space<vmem>>, vector<16x128xf32>
      tpu.vector_store %arg7[%c0_12, %c0_13], %14 {strides = array<i32>} : memref<16x128xf32, #tpu.memory_space<vmem>>, vector<16x128xf32>,
    } else {
    }
    %c0 = arith.constant 0 : index
    %c0_1 = arith.constant 0 : index
    %3 = vector.load %arg7[%c0, %c0_1] : memref<16x128xf32, #tpu.memory_space<vmem>>, vector<16x128xf32>
    %c0_2 = arith.constant 0 : index
    %c0_3 = arith.constant 0 : index
    %4 = vector.load %arg3[%c0_2, %c0_3] : memref<16x128xbf16, #tpu.memory_space<vmem>>, vector<16x128xbf16>
    %c0_4 = arith.constant 0 : index
    %c0_5 = arith.constant 0 : index
    %5 = vector.load %arg4[%c0_4, %c0_5] : memref<128x128xbf16, #tpu.memory_space<vmem>>, vector<128x128xbf16>
    %cst = arith.constant dense<0.000000e+00> : vector<16x128xf32>
    %6 = tpu.matmul %4, %5, %cst {dimension_numbers = #tpu.dot_dimension_numbers<[1], [0], [0], [1], [0, 0, 1, 1], [], []>} : vector<16x128xbf16>, vector<128x128xbf16>, vector<16x128xf32> -> vector<16x128xf32>
    %7 = arith.addf %3, %6 : vector<16x128xf32>
    %c0_6 = arith.constant 0 : index
    %c0_7 = arith.constant 0 : index
    %8 = vector.load %arg7[%c0_6, %c0_7] : memref<16x128xf32, #tpu.memory_space<vmem>>, vector<16x128xf32>
    tpu.vector_store %arg7[%c0_6, %c0_7], %7 {strides = array<i32>} : memref<16x128xf32, #tpu.memory_space<vmem>>, vector<16x128xf32>,
    %c0_i32_8 = arith.constant 0 : i32
    %9 = arith.cmpi eq, %arg2, %c0_i32_8 : i32
    %10 = arith.extui %9 : i1 to i32
    %c0_i32_9 = arith.constant 0 : i32
    %11 = arith.cmpi ne, %10, %c0_i32_9 : i32
    scf.if %11 {
      %c0_10 = arith.constant 0 : index
      %c0_11 = arith.constant 0 : index
      %12 = vector.load %arg7[%c0_10, %c0_11] : memref<16x128xf32, #tpu.memory_space<vmem>>, vector<16x128xf32>
      %c0_12 = arith.constant 0 : index
      %c0_13 = arith.constant 0 : index
      %13 = vector.load %arg6[%c0_12, %c0_13] : memref<16x128xf32, #tpu.memory_space<vmem>>, vector<16x128xf32>
      tpu.vector_store %arg6[%c0_12, %c0_13], %12 {strides = array<i32>} : memref<16x128xf32, #tpu.memory_space<vmem>>, vector<16x128xf32>,
    } else {
    }
    return
  }
  func.func @transform_0(%arg0: i32, %arg1: i32, %arg2: i32) -> (i32, i32) {
    %c0_i32 = arith.constant 0 : i32
    return %arg0, %arg2 : i32, i32
  }
  func.func @transform_1(%arg0: i32, %arg1: i32, %arg2: i32) -> (i32, i32) {
    %c0_i32 = arith.constant 0 : i32
    return %arg2, %arg1 : i32, i32
  }
  func.func @transform_2(%arg0: i32, %arg1: i32, %arg2: i32) -> (i32, i32) {
    %c0_i32 = arith.constant 0 : i32
    %c0_i32_0 = arith.constant 0 : i32
    return %c0_i32, %arg1 : i32, i32
  }
  func.func @transform_3(%arg0: i32, %arg1: i32, %arg2: i32) -> (i32, i32) {
    %c0_i32 = arith.constant 0 : i32
    return %arg0, %arg1 : i32, i32
  }
}

</mosaic_0001>

<bundles_post_ra>
// kernel: _linear_forward.1
= control target key start
LH: loop header
LB: loop body
LE: loop exit
PB: predicated region body
PF: predicated region fallthrough
CT: control target
= control target key end

     0   :  { %8 = vsyncpa [#allocation4], 0  ;;  %s248_s12 = smov [#allocation3]   ;;  %s288_s0 = inlined_call_operand.vmem [shape: bf16[16,128], index: 0, kind: input, shape index: {}]   ;;  %s289_s1 = inlined_call_operand.hbm [shape: bf16[128,128], index: 1, kind: input, shape index: {}]   ;;  %s290_s2 = inlined_call_operand.vmem [shape: f32[1,128], index: 2, kind: input, shape index: {}]   ;;  %s291_s3 = inlined_call_operand.vmem [shape: f32[16,128], index: 3, kind: output, shape index: {}]  }
   0x1   :  { %s16_s13 = sshll.u32 %s248_s12, 4  ;;  %s17_s13 = int_to_ptr.vmem [resolvable:$true] %s16_s13 }
   0x2   :  { %s234_s14 = scalar_lea.vmem %s17_s13, 1024  ;;  %p239_p1 = scmp.lt.s32.totalorder %s17_s13, %s17_s13 }
   0x3   :  { %p235_p0 = scmp.ne.s32.totalorder %s17_s13, %s234_s14  ;;  %p240_p2 = scmp.lt.s32.totalorder %s234_s14, %s234_s14 }
   0x5   :  { %p241_p3 = por %p240_p2, %p239_p1 }
   0x7   :  { %p242_p4 = pnand %p241_p3, %p235_p0 }
   0x9   :  { %245 = shalt.err (!%p242_p4)
}
   0xa   :  { %s249_s15 = smov 64   ;;  %s250_s16 = smov 4  }
   0xb   :  { %22 = dma.hbm_to_vmem [thread:$0]  %s289_s1, 1024, %s17_s13, [#allocation4], %s249_s15, %s249_s15, %s250_s16  }
   0xc   :  { %246 = dma.done.wait [#allocation4], 1024  }
   0xd   :  { %247 = vsyncadd [#allocation4], 4294966272  ;;  %v251_v0 = vmov 0.0   ;;  %vm252_vm0 = vmmov 0   ;;  %v217_v1 = vld [vmem:[#allocation3 + $0x38] sm:$0xff]   ;;  %v218_v2 = vld [vmem:[#allocation3 + $0x30] sm:$0xff]  }
   0xe   :  { %192 = vmatprep.subr.bf16.mxu0 %v251_v0  ;;  %208 = vmatprep.mubr.msk.bf16.mxu0 %vm252_vm0, %v251_v0  ;;  %v219_v3 = vld [vmem:[#allocation3 + $0x28] sm:$0xff]   ;;  %v220_v4 = vld [vmem:[#allocation3 + $0x20] sm:$0xff]   ;;  %v221_v5 = vld [vmem:[#allocation3 + $0x18] sm:$0xff]  }
   0xf   :  { %193 = vmatpush3.bf16.msra.mxu0 %v217_v1  ;;  %v222_v6 = vld [vmem:[#allocation3 + $0x10] sm:$0xff]   ;;  %v223_v7 = vld [vmem:[#allocation3 + $0x8] sm:$0xff]   ;;  %v224_v8 = vld [vmem:[#allocation3] sm:$0xff]  }
  0x10   :  { %194 = vmatprep.subr.bf16.mxu0 %v251_v0  ;;  %v225_v9 = vld [vmem:[%s288_s0] sm:$0xff]  }
  0x11   :  { %v173_v10 = vld [vmem:[%s290_s2] ss:$0 sm:$0xff] }
  0x13   :  { %195 = vmatpush3.bf16.msra.mxu0 %v218_v2 }
  0x14   :  { %196 = vmatprep.subr.bf16.mxu0 %v251_v0 }
  0x17   :  { %197 = vmatpush3.bf16.msra.mxu0 %v219_v3 }
  0x18   :  { %198 = vmatprep.subr.bf16.mxu0 %v251_v0 }
  0x1b   :  { %199 = vmatpush3.bf16.msra.mxu0 %v220_v4 }
  0x1c   :  { %200 = vmatprep.subr.bf16.mxu0 %v251_v0 }
  0x1f   :  { %201 = vmatpush3.bf16.msra.mxu0 %v221_v5 }
  0x20   :  { %202 = vmatprep.subr.bf16.mxu0 %v251_v0 }
  0x23   :  { %203 = vmatpush3.bf16.msra.mxu0 %v222_v6 }
  0x24   :  { %204 = vmatprep.subr.bf16.mxu0 %v251_v0 }
  0x27   :  { %205 = vmatpush3.bf16.msra.mxu0 %v223_v7 }
  0x28   :  { %206 = vmatprep.subr.bf16.mxu0 %v251_v0 }
  0x2b   :  { %207 = vmatpush3.bf16.msra.mxu0 %v224_v8 }
  0x2e   :  { %209 = vmatmul.mubr.bf16.vlgmr.msra.gmra.mxu0 %v225_v9 }
  0xee   :  { %v150_v11 = vpop.f32.mrf.mxu0 }
  0xef   :  { %v157_v12 = vadd.f32 %v173_v10, %v150_v11 }
  0xf0   :  { %v210_v13 = vpop.f32.mrf.mxu0 }
  0xf1   :  { %166 = vst [vmem:[%s291_s3] sm:$0xff] %v157_v12 }
  0xf2   :  { %v153_v14 = vpop.f32.mrf.mxu0 }
  0xf3   :  { %v158_v15 = vadd.f32 %v173_v10, %v153_v14 }
  0xf4   :  { %v211_v16 = vpop.f32.mrf.mxu0 }
  0xf5   :  { %167 = vst [vmem:[%s291_s3 + $0x8] sm:$0xff] %v158_v15 }
  0xf6   :  { %172 = vsyncpa [#allocation4], 1 }

</bundles_post_ra>
